<compile_context>
chip_gen: v7x
topology: tpu7x:2x2x1
jax: 0.10.0
libtpu: 0.0.40
codegen_flags: <defaults>
</compile_context>

<pallas_src>
import math
from typing import NamedTuple

import jax
import jax.numpy as jnp
from jax.experimental import pallas as pl
from jax.experimental.pallas import tpu as pltpu


# ----------------------------- kernel -----------------------------

def _pe_add_kernel(x_ref, pe_ref, o_ref):
    # x_ref / pe_ref / o_ref are 2-D tiles of identical shape
    # (the size-1 batch dim is squeezed out by the BlockSpec).
    o_ref[...] = x_ref[...] + pe_ref[...]


# ----------------------------- init (buffer setup, done once) -----------------------------

class PositionalEncodingState(NamedTuple):
    pe: jax.Array        # (max_len, d_model), model dtype
    pe_flat: jax.Array   # (ceil(max_len*d_model/128), 128), model dtype, lane-dense


def make_positional_encoding_state(d_model: int, max_len: int = 7000,
                                   dtype=jnp.float32) -> PositionalEncodingState:
    """Mirrors the PyTorch __init__ (odd d_model safe) and pre-bakes the lane-dense view."""
    position = jnp.arange(0, max_len, dtype=jnp.float32)[:, None]             # (max_len, 1)
    div_term = jnp.exp(jnp.arange(0, d_model, 2, dtype=jnp.float32)
                       * (-math.log(10000.0) / d_model))                      # (ceil(D/2),)
    angles = position * div_term                                              # (max_len, ceil(D/2))
    pe = jnp.zeros((max_len, d_model), dtype=jnp.float32)
    pe = pe.at[:, 0::2].set(jnp.sin(angles))
    pe = pe.at[:, 1::2].set(jnp.cos(angles)[:, : d_model // 2])               # truncate for odd D
    pe = pe.astype(dtype)                                                     # cast ONCE here

    flat = pe.reshape(-1)
    pad = (-flat.shape[0]) % 128
    if pad:
        flat = jnp.pad(flat, (0, pad))
    pe_flat = flat.reshape(-1, 128)                                           # lane-dense view
    return PositionalEncodingState(pe=pe, pe_flat=pe_flat)


# ----------------------------- forward -----------------------------

_TARGET_TILE_BYTES = 1536 * 1024   # ~1.5 MB/buffer: 3 streams x double-buffer ~= 9 MB (fits v5e)
_MIN_KERNEL_BYTES = 1 << 20        # below ~1 MiB, plain XLA add beats the launch overhead


def _sublane_align(dtype) -> int:
    # f32 -> 8, bf16/f16 -> 16, int8/fp8 -> 32 (sub-32-bit dtypes pack along sublanes)
    return max(8, 32 // jnp.dtype(dtype).itemsize)


def _flat_path(x, pe_flat, B, S, D):
    """Lane-dense path: view (S, D) as (R, 128); tile rows with a fixed ~1.5 MB tile."""
    dtype = x.dtype
    itemsize = jnp.dtype(dtype).itemsize
    align = _sublane_align(dtype)
    R = (S * D) // 128
    x2 = x.reshape(B, R, 128)  # layout-compatible reshape (no copy)

    target_rows = max(align, (_TARGET_TILE_BYTES // (128 * itemsize)) // align * align)
    TR = min(target_rows, (R // align) * align)

    out = pl.pallas_call(
        _pe_add_kernel,
        out_shape=jax.ShapeDtypeStruct((B, R, 128), dtype),
        grid_spec=pltpu.PrefetchScalarGridSpec(
            num_scalar_prefetch=0,
            grid=(pl.cdiv(R, TR), B),  # batch innermost -> pe tile stays VMEM-resident
            in_specs=[
                pl.BlockSpec((pl.Squeezed(), TR, 128), lambda r, b: (b, r, 0)),
                pl.BlockSpec((TR, 128), lambda r, b: (r, 0)),  # window into full pe_flat
            ],
            out_specs=pl.BlockSpec((pl.Squeezed(), TR, 128), lambda r, b: (b, r, 0)),
        ),
        compiler_params=pltpu.CompilerParams(
            dimension_semantics=("parallel", "parallel"),  # both axes shardable (v7x 2 TCs)
        ),
    )(x2, pe_flat)
    return out.reshape(B, S, D)


def _seq_path(x, pe, B, S, D):
    """General path: tile the sequence axis, full D as the lane dim."""
    dtype = x.dtype
    itemsize = jnp.dtype(dtype).itemsize
    align = _sublane_align(dtype)

    target_rows = max(align, (_TARGET_TILE_BYTES // (D * itemsize)) // align * align)
    TS = min(target_rows, (S // align) * align)

    return pl.pallas_call(
        _pe_add_kernel,
        out_shape=jax.ShapeDtypeStruct((B, S, D), dtype),
        grid_spec=pltpu.PrefetchScalarGridSpec(
            num_scalar_prefetch=0,
            grid=(pl.cdiv(S, TS), B),  # batch innermost -> pe tile stays VMEM-resident
            in_specs=[
                pl.BlockSpec((pl.Squeezed(), TS, D), lambda s, b: (b, s, 0)),
                pl.BlockSpec((TS, D), lambda s, b: (s, 0)),  # window into full pe table
            ],
            out_specs=pl.BlockSpec((pl.Squeezed(), TS, D), lambda s, b: (b, s, 0)),
        ),
        compiler_params=pltpu.CompilerParams(
            dimension_semantics=("parallel", "parallel"),
        ),
    )(x, pe)


def positional_encoding_forward(x: jnp.ndarray,
                                state: PositionalEncodingState) -> jnp.ndarray:
    """x: (B, S, D).  Returns x + pe[:S, :], broadcast over batch."""
    B, S, D = x.shape
    dtype = x.dtype
    itemsize = jnp.dtype(dtype).itemsize
    align = _sublane_align(dtype)

    def _xla_fallback():
        # Only touches the S rows actually needed (no full-table traffic).
        return x + state.pe[:S].astype(dtype)[None]

    if state.pe.dtype != dtype:
        # TODO(synk): build the state with the model dtype at init to keep the kernel path.
        return _xla_fallback()
    if B * S * D * itemsize < _MIN_KERNEL_BYTES:
        return _xla_fallback()  # launch overhead dominates for tiny problems
    if (S * D) % 128 == 0 and (S * D) // 128 >= align:
        return _flat_path(x, state.pe_flat, B, S, D)
    if D >= 128 and S >= align:
        return _seq_path(x, state.pe, B, S, D)
    # Small, non-128-multiple D: masked lane stores would waste store BW -> XLA is faster.
    return _xla_fallback()


# ----------------------------- tests -----------------------------

if __name__ == "__main__":
    MAX_LEN = 7000

    def check(B, S, D, seed):
        state = make_positional_encoding_state(D, MAX_LEN)
        x = jax.random.normal(jax.random.PRNGKey(seed), (B, S, D), dtype=jnp.float32)
        out = jax.block_until_ready(positional_encoding_forward(x, state))
        ref = x + state.pe[None, :S, :]
        assert out.shape == (B, S, D)
        assert jnp.allclose(out, ref, atol=1e-6, rtol=1e-6)

    # 1) Small shape consistent with the module (B=2, S=8, D=32) -> XLA small-problem path.
    check(2, 8, 32, seed=0)

    # 2) Lane-dense flattened kernel path (S*D % 128 == 0, > 1 MiB).
    check(4, 512, 256, seed=1)

    # 3) General sequence-tiled kernel path (D >= 128, S*D not a multiple of 128, cdiv grid
    #    with a clipped partial last block).
    check(4, 500, 136, seed=2)

    # 4) Odd d_model (exercises the cos-truncation in the table builder) -> fallback path.
    check(2, 8, 31, seed=3)

    print("KERNEL_OK")
</pallas_src>

<mosaic_0001>
module attributes {stable_mosaic.version = 11 : i64} {
  func.func @_pe_add_kernel(%arg0: i32, %arg1: i32, %arg2: memref<1x1024x128xf32, #tpu.memory_space<vmem>>, %arg3: memref<1024x128xf32, #tpu.memory_space<vmem>>, %arg4: memref<1x1024x128xf32, #tpu.memory_space<vmem>>) attributes {dimension_semantics = [#tpu.dimension_semantics<parallel>, #tpu.dimension_semantics<parallel>], iteration_bounds = array<i64: 1, 4>, scalar_prefetch = 0 : i64, scratch_operands = 0 : i64, tpu.core_type = #tpu.core_type<tc>, window_params = [{transform_indices = @transform_0, window_bounds = array<i64: 1, 1024, 128>}, {transform_indices = @transform_1, window_bounds = array<i64: 1024, 128>}, {transform_indices = @transform_2, window_bounds = array<i64: 1, 1024, 128>}]} {
    %c0 = arith.constant 0 : index
    %c0_0 = arith.constant 0 : index
    %c0_1 = arith.constant 0 : index
    %0 = vector.load %arg2[%c0, %c0_0, %c0_1] : memref<1x1024x128xf32, #tpu.memory_space<vmem>>, vector<1x1024x128xf32>
    %1 = vector.shape_cast %0 : vector<1x1024x128xf32> to vector<1024x128xf32>
    %c0_2 = arith.constant 0 : index
    %c0_3 = arith.constant 0 : index
    %2 = vector.load %arg3[%c0_2, %c0_3] : memref<1024x128xf32, #tpu.memory_space<vmem>>, vector<1024x128xf32>
    %3 = arith.addf %1, %2 : vector<1024x128xf32>
    %c0_4 = arith.constant 0 : index
    %c0_5 = arith.constant 0 : index
    %c0_6 = arith.constant 0 : index
    %4 = vector.load %arg4[%c0_4, %c0_5, %c0_6] : memref<1x1024x128xf32, #tpu.memory_space<vmem>>, vector<1x1024x128xf32>
    %5 = vector.shape_cast %4 : vector<1x1024x128xf32> to vector<1024x128xf32>
    %6 = vector.shape_cast %3 : vector<1024x128xf32> to vector<1x1024x128xf32>
    tpu.vector_store %arg4[%c0_4, %c0_5, %c0_6], %6 {strides = array<i32>} : memref<1x1024x128xf32, #tpu.memory_space<vmem>>, vector<1x1024x128xf32>,
    return
  }
  func.func @transform_0(%arg0: i32, %arg1: i32) -> (i32, i32, i32) {
    %c0_i32 = arith.constant 0 : i32
    %c0_i32_0 = arith.constant 0 : i32
    return %arg1, %arg0, %c0_i32 : i32, i32, i32
  }
  func.func @transform_1(%arg0: i32, %arg1: i32) -> (i32, i32) {
    %c0_i32 = arith.constant 0 : i32
    %c0_i32_0 = arith.constant 0 : i32
    return %arg0, %c0_i32 : i32, i32
  }
  func.func @transform_2(%arg0: i32, %arg1: i32) -> (i32, i32, i32) {
    %c0_i32 = arith.constant 0 : i32
    %c0_i32_0 = arith.constant 0 : i32
    return %arg1, %arg0, %c0_i32 : i32, i32, i32
  }
}

</mosaic_0001>

<bundles_post_ra>
// kernel: tpu_custom_call.1
= control target key start
LH: loop header
LB: loop body
LE: loop exit
PB: predicated region body
PF: predicated region fallthrough
CT: control target
= control target key end

     0   :  { %7 = vsyncpa [#allocation3], 0  ;;  %s1601_s0 = inlined_call_operand.hbm [shape: f32[4,1024,128], index: 0, kind: input, shape index: {}]   ;;  %s1602_s1 = inlined_call_operand.hbm [shape: f32[14000,128], index: 1, kind: input, shape index: {}]   ;;  %s1603_s2 = inlined_call_operand.hbm [shape: f32[4,1024,128], index: 2, kind: output, shape index: {}]  }
   0x1   :  { %9 = vsyncpa [#allocation3 + $0x1], 0 }
   0x2   :  { %10 = vsyncpa [#allocation6], 0 }
   0x3   :  { %11 = vsyncpa [#allocation4], 0 }
   0x4   :  { %13 = vsyncpa [#allocation4 + $0x1], 0  ;;  %s1107_s9 = smov 0   ;;  %s1109_s10 = smov 0  }
   0x5   :  { %s1111_s11 = smov 0   ;;  %s1113_s12 = smov 0  }
   0x6   :  { %s1115_s13 = smov 0   ;;  %s1117_s14 = smov 0  }
   0x7 LB: > { %s843_s15 = sadd.s32 4294967295, %s1083_s14   ;;  %s844_s16 = sadd.s32 4294967294, %s1083_s14   ;;  %s1083_s14 = sphi %s1117_s14, %s19_s14   ;;  %s1079_s13 = sphi %s1115_s13, %s1626_s13   ;;  %s1075_s12 = sphi %s1113_s12, %s1625_s12   ;;  %s1071_s11 = sphi %s1111_s11, %s1624_s11   ;;  %s1067_s10 = sphi %s1109_s10, %s1623_s10   ;;  %s1063_s9 = sphi %s1107_s9, %s1622_s9  }
   0x8   : > { %p53_p0 = scmp.ne.s32.totalorder %s1067_s10, %s1063_s9  ;;  %p1141_p1 = scmp.eq.s32.totalorder %s843_s15, 0 }
   0x9   : > { %p1145_p2 = scmp.eq.s32.totalorder %s843_s15, 3  ;;  %p111_p3 = scmp.eq.s32.totalorder %s844_s16, 3 }
   0xa   : > { %s1608_s17 = scalar_select %p1141_p1, 1, 0 }
   0xb   : > { %s1609_s18 = scalar_select %p1145_p2, 1, 0 }
   0xc   : > { %p1151_p4 = por %p1141_p1, %p53_p0  ;;  %p845_p5 = scmp.ge.s32.totalorder %s1083_s14, 1 }
   0xd   : > { %p1156_p6 = por %p111_p3, %p53_p0  ;;  %p118_p7 = scmp.lt.s32.totalorder %s1083_s14, 5 }
   0xe   : > { %s1610_s19 = scalar_select %p1151_p4, 1, 0 }
   0xf   : > { %s1611_s20 = scalar_select %p1156_p6, 1, 0 }
  0x10   : > { %p1161_p8 = pnand %p845_p5, %p118_p7  ;;  %s1085_s22 = smov [#allocation5]  }
  0x11   : > { %s139_s23 = sshll.u32 %s1085_s22, 4  ;;  %s28_s25 = sadd.s32 1, %s1079_s13  ;;  %s1165_s23 = int_to_ptr.vmem [resolvable:$true] %s139_s23 }
  0x12   : > { %s1612_s21 = scalar_select %p1161_p8, 1, 0 }
  0x13   : > { %p870_p9 = pneg %p1161_p8  ;;  %s939_s28 = scalar_lea.hbm %s1602_s1, 16384 }
  0x14   : > { %p940_p11 = scmp.ne.s32.totalorder %s1602_s1, %s939_s28  ;;  %s944_s5 = scalar_lea.hbm %s1602_s1, 224000 }
  0x15   : > { %p1171_p10 = pnand %p870_p9, %p1141_p1  ;;  %p945_p3 = scmp.lt.u32.totalorder %s944_s5, %s939_s28 }
  0x16   : > { %p946_p5 = scmp.lt.u32.totalorder %s939_s28, %s1602_s1 }
  0x17   : > { %p941_p12 = pneg %p1171_p10 }
  0x18   : > { %p947_p7 = por %p946_p5, %p945_p3 }
  0x19   : > { %p942_p13 = pnand %p941_p12, %p940_p11 }
  0x1b   : > { %p943_p0 = pneg %p942_p13 }
  0x1d   : > { %p948_p9 = pnand %p947_p7, %p943_p0 }
  0x1f   : > { %951 = shalt.err (!%p948_p9)
}
  0x20   : > { %s952_s8 = scalar_lea.vmem %s1165_s23, 16384  ;;  %p960_p13 = scmp.lt.s32.totalorder %s1165_s23, %s1165_s23 }
  0x21   : > { %p953_p6 = scmp.ne.s32.totalorder %s1165_s23, %s952_s8  ;;  %p961_p4 = scmp.lt.s32.totalorder %s952_s8, %s952_s8 }
  0x23   : > { %p955_p1 = pnand %p953_p6, %p941_p12  ;;  %p962_p8 = por %p961_p4, %p960_p13 }
  0x25   : > { %p956_p11 = pneg %p955_p1 }
  0x27   : > { %p963_p2 = pnand %p962_p8, %p956_p11 }
  0x29   : > { %966 = shalt.err (!%p963_p2)
}
  0x2a   : > { %s1086_s15 = smov 128   ;;  %s1087_s16 = smov 8  }
  0x2b   : > { %873 = dma.hbm_to_vmem [thread:$0]  (!%p1171_p10), %s1602_s1, 16384, %s1165_s23, [#allocation6], %s1086_s15, %s1086_s15, %s1087_s16  }
  0x2c   : > { %p29_p1 = scmp.ge.s32.totalorder %s28_s25, 4  ;;  %s40_s27 = sadd.s32 1, %s1071_s11 }
  0x2d   : > { %p47_p2 = scmp.ne.s32.totalorder %s1071_s11, %s1067_s10  ;;  %p48_p4 = scmp.eq.s32.totalorder %s1083_s14, 0 }
  0x2e   : > { %s1628_s25 = smov (%p29_p1, %s28_s25), 0  ;;  %p1615_p8 = scmp.ne.s32.totalorder %s1609_s18, 0 }
  0x2f   : > { %p1209_p6 = por %p48_p4, %p47_p2  ;;  %s35_s29 = ssub.s32 %s1079_s13, %s1628_s25 }
  0x30   : > { %p1215_p12 = por %p1615_p8, %p47_p2  ;;  %p883_p0 = scmp.lt.s32.totalorder %s1083_s14, 4 }
  0x31   : > { %p38_p10 = scmp.eq.s32.totalorder %s35_s29, 0  ;;  %s153_s23 = sand.u32 1, %s1071_s11  }
  0x32   : > { %s848_s30 = sshll.u32 %s153_s23, 10  ;;  %s860_s4 = sshll.u32 %s1079_s13, 14 }
  0x33   : > { %s1224_s3 = scalar_select %p38_p10, %s1071_s11, %s40_s27  }
  0x34   : > { %s1230_s7 = scalar_lea.hbm %s1601_s0, %s860_s4  ;;  %s157_s18 = scalar_lea.vmem [#allocation2], %s848_s30 }
  0x35   : > { %s166_s8 = sshll.u32 %s157_s18, 4  ;;  %p1236_p3 = pnand %p883_p0, %p1209_p6  ;;  %s1232_s8 = int_to_ptr.vmem [resolvable:$true] %s166_s8 }
  0x36   : > { %s1240_s26 = scalar_lea.sflag [#allocation3], %s153_s23  ;;  %s967_s27 = scalar_lea.hbm %s1230_s7, 16384 }
  0x37   : > { %p968_p5 = scmp.ne.s32.totalorder %s1230_s7, %s967_s27  ;;  %p969_p7 = pneg %p1236_p3 }
  0x38   : > { %s972_s28 = scalar_lea.hbm %s1601_s0, 65536  ;;  %p973_p13 = scmp.lt.u32.totalorder %s1230_s7, %s1601_s0 }
  0x39   : > { %p970_p9 = pnand %p969_p7, %p968_p5  ;;  %p974_p1 = scmp.lt.u32.totalorder %s972_s28, %s967_s27 }
  0x3a   : > { %p976_p4 = scmp.lt.u32.totalorder %s967_s27, %s1230_s7 }
  0x3b   : > { %p971_p11 = pneg %p970_p9  ;;  %p975_p2 = por %p974_p1, %p973_p13 }
  0x3d   : > { %p977_p6 = por %p976_p4, %p975_p2 }
  0x3f   : > { %p978_p8 = pnand %p977_p6, %p971_p11 }
  0x41   : > { %981 = shalt.err (!%p978_p8)
}
  0x42   : > { %s982_s23 = scalar_lea.vmem %s1232_s8, 16384  ;;  %s1088_s6 = smov [#allocation2]  }
  0x43   : > { %p983_p0 = scmp.ne.s32.totalorder %s1232_s8, %s982_s23  ;;  %s987_s18 = sshll.u32 %s1088_s6, 4  ;;  %s988_s18 = int_to_ptr.vmem [resolvable:$false] %s987_s18 }
  0x44   : > { %s989_s29 = scalar_lea.vmem %s988_s18, 32768  ;;  %p990_p9 = scmp.lt.s32.totalorder %s1232_s8, %s988_s18 }
  0x45   : > { %p985_p10 = pnand %p983_p0, %p969_p7  ;;  %p991_p13 = scmp.lt.s32.totalorder %s989_s29, %s982_s23 }
  0x47   : > { %p986_p5 = pneg %p985_p10  ;;  %p992_p1 = por %p991_p13, %p990_p9 }
  0x49   : > { %p993_p2 = pnand %p992_p1, %p986_p5 }
  0x4b   : > { %996 = shalt.err (!%p993_p2)
}
  0x4c   : > { %877 = dma.hbm_to_vmem [thread:$0]  (!%p1236_p3), %s1230_s7, 16384, %s1232_s8, %s1240_s26, %s1086_s15, %s1086_s15, %s1087_s16  }
  0x4d   : > { %p1618_p7 = scmp.ne.s32.totalorder %s1612_s21, 0 }
  0x4e   : > { %s1274_s27 = sand.u32 (!%p1618_p7), 1, %s1067_s10   ;;  %p1619_p11 = scmp.ne.s32.totalorder (!%p1618_p7), %s1610_s19, 0 }
  0x4f   : > { %178 = sbr.rel (%p1618_p7) target bundleno = 207 (0xcf), region = 28  ;;  %s852_s30 = sshll.u32 (!%p1618_p7), %s1274_s27, 10 }
  0x50   : > { %s181_s28 = scalar_lea.sflag (!%p1618_p7), [#allocation3], %s1274_s27  ;;  %s1278_s4 = scalar_lea.vmem (!%p1618_p7), [#allocation2], %s852_s30 }
  0x56   : > { %1050 = dma.done.wait (%p1619_p11), %s181_s28, 16384  }
  0x57   : > { %1052 = vsyncadd (%p1619_p11), %s181_s28, 4294950912  ;;  %p1620_p3 = scmp.ne.s32.totalorder %s1608_s17, 0 }
  0x59   : > { %1054 = dma.done.wait (%p1620_p3), [#allocation6], 16384  }
  0x5a   : > { %1056 = vsyncadd (%p1620_p3), [#allocation6], 4294950912  ;;  %v216_v0 = vld [vmem:[%s1278_s4] sm:$0xff]  ;;  %v217_v2 = vld [vmem:[%s1278_s4 + $0x8] sm:$0xff]  ;;  %s1293_s17 = scalar_lea.vmem [#allocation7], %s852_s30  ;;  %s861_s19 = sshll.u32 %s1075_s12, 14 }
  0x5b   : > { %v344_v1 = vld [vmem:[#allocation5] sm:$0xff]  ;;  %v345_v4 = vld [vmem:[#allocation5 + $0x8] sm:$0xff]  ;;  %v218_v5 = vld [vmem:[%s1278_s4 + $0x10] sm:$0xff]  ;;  %s744_s21 = sshll.u32 %s1293_s17, 4  ;;  %s1547_s16 = scalar_lea.hbm %s1603_s2, %s861_s19  ;;  %s1549_s21 = int_to_ptr.vmem [resolvable:$true] %s744_s21 }
  0x5c   : > { %v472_v3 = vadd.f32 %v344_v1, %v216_v0  ;;  %v346_v6 = vld [vmem:[#allocation5 + $0x10] sm:$0xff]  ;;  %v473_v7 = vadd.f32 %v345_v4, %v217_v2  ;;  %v219_v9 = vld [vmem:[%s1278_s4 + $0x18] sm:$0xff]  ;;  %v220_v11 = vld [vmem:[%s1278_s4 + $0x20] sm:$0xff]  ;;  %s729_s7 = scalar_lea.sflag [#allocation4], %s1274_s27  ;;  %s997_s8 = scalar_lea.vmem %s1549_s21, 16384 }
  0x5d   : > { %v474_v8 = vadd.f32 %v346_v6, %v218_v5  ;;  %v347_v10 = vld [vmem:[#allocation5 + $0x18] sm:$0xff]  ;;  %v348_v13 = vld [vmem:[#allocation5 + $0x20] sm:$0xff]  ;;  %v221_v14 = vld [vmem:[%s1278_s4 + $0x28] sm:$0xff]  ;;  %p998_p4 = scmp.ne.s32.totalorder %s1549_s21, %s997_s8  ;;  %s1089_s22 = smov [#allocation7]  }
  0x5e   : > { %600 = vst [vmem:[%s1293_s17] sm:$0xff] %v472_v3  ;;  %v475_v12 = vadd.f32 %v347_v10, %v219_v9  ;;  %v349_v15 = vld [vmem:[#allocation5 + $0x28] sm:$0xff]  ;;  %601 = vst [vmem:[%s1293_s17 + $0x8] sm:$0xff] %v473_v7  ;;  %v476_v16 = vadd.f32 %v348_v13, %v220_v11  ;;  %v222_v18 = vld [vmem:[%s1278_s4 + $0x30] sm:$0xff]  ;;  %s1001_s26 = sshll.u32 %s1089_s22, 4  ;;  %s1002_s26 = int_to_ptr.vmem [resolvable:$false] %s1001_s26 }
  0x5f   : > { %602 = vst [vmem:[%s1293_s17 + $0x10] sm:$0xff] %v474_v8  ;;  %v477_v17 = vadd.f32 %v349_v15, %v221_v14  ;;  %v350_v19 = vld [vmem:[#allocation5 + $0x30] sm:$0xff]  ;;  %v223_v20 = vld [vmem:[%s1278_s4 + $0x38] sm:$0xff]  ;;  %v224_v23 = vld [vmem:[%s1278_s4 + $0x40] sm:$0xff]  ;;  %p999_p6 = pnand %p998_p4, %p1215_p12  ;;  %s1003_s5 = scalar_lea.vmem %s1002_s26, 32768 }
  0x60   : > { %603 = vst [vmem:[%s1293_s17 + $0x18] sm:$0xff] %v475_v12  ;;  %v478_v21 = vadd.f32 %v350_v19, %v222_v18  ;;  %v351_v22 = vld [vmem:[#allocation5 + $0x38] sm:$0xff]  ;;  %v352_v24 = vld [vmem:[#allocation5 + $0x40] sm:$0xff]  ;;  %604 = vst [vmem:[%s1293_s17 + $0x20] sm:$0xff] %v476_v16  ;;  %p1004_p0 = scmp.lt.s32.totalorder %s1549_s21, %s1002_s26  ;;  %p1005_p10 = scmp.lt.s32.totalorder %s1003_s5, %s997_s8 }
  0x61   : > { %605 = vst [vmem:[%s1293_s17 + $0x28] sm:$0xff] %v477_v17  ;;  %v479_v25 = vadd.f32 %v351_v22, %v223_v20  ;;  %v480_v26 = vadd.f32 %v352_v24, %v224_v23  ;;  %v225_v27 = vld [vmem:[%s1278_s4 + $0x48] sm:$0xff]  ;;  %v226_v29 = vld [vmem:[%s1278_s4 + $0x50] sm:$0xff]  ;;  %v227_v32 = vld [vmem:[%s1278_s4 + $0x58] sm:$0xff]  ;;  %p1000_p8 = pneg %p999_p6 }
  0x62   : > { %v353_v28 = vld [vmem:[#allocation5 + $0x48] sm:$0xff]  ;;  %606 = vst [vmem:[%s1293_s17 + $0x30] sm:$0xff] %v478_v21  ;;  %v354_v31 = vld [vmem:[#allocation5 + $0x50] sm:$0xff]  ;;  %v355_v33 = vld [vmem:[#allocation5 + $0x58] sm:$0xff]  ;;  %p1006_p5 = por %p1005_p10, %p1004_p0 }
  0x63   : > { %v481_v30 = vadd.f32 %v353_v28, %v225_v27  ;;  %607 = vst [vmem:[%s1293_s17 + $0x38] sm:$0xff] %v479_v25  ;;  %608 = vst [vmem:[%s1293_s17 + $0x40] sm:$0xff] %v480_v26  ;;  %v482_v34 = vadd.f32 %v354_v31, %v226_v29  ;;  %v483_v35 = vadd.f32 %v355_v33, %v227_v32  ;;  %v228_v36 = vld [vmem:[%s1278_s4 + $0x60] sm:$0xff]  ;;  %v229_v38 = vld [vmem:[%s1278_s4 + $0x68] sm:$0xff] }
  0x64   : > { %v356_v37 = vld [vmem:[#allocation5 + $0x60] sm:$0xff]  ;;  %v357_v40 = vld [vmem:[#allocation5 + $0x68] sm:$0xff]  ;;  %v230_v41 = vld [vmem:[%s1278_s4 + $0x70] sm:$0xff]  ;;  %p1007_p9 = pnand %p1006_p5, %p1000_p8 }
  0x65   : > { %609 = vst [vmem:[%s1293_s17 + $0x48] sm:$0xff] %v481_v30  ;;  %v484_v39 = vadd.f32 %v356_v37, %v228_v36  ;;  %v358_v42 = vld [vmem:[#allocation5 + $0x70] sm:$0xff]  ;;  %610 = vst [vmem:[%s1293_s17 + $0x50] sm:$0xff] %v482_v34  ;;  %v485_v43 = vadd.f32 %v357_v40, %v229_v38  ;;  %v231_v45 = vld [vmem:[%s1278_s4 + $0x78] sm:$0xff] }
  0x66   : > { %611 = vst [vmem:[%s1293_s17 + $0x58] sm:$0xff] %v483_v35  ;;  %v486_v44 = vadd.f32 %v358_v42, %v230_v41  ;;  %v359_v46 = vld [vmem:[#allocation5 + $0x78] sm:$0xff]  ;;  %v232_v47 = vld [vmem:[%s1278_s4 + $0x80] sm:$0xff]  ;;  %v233_v50 = vld [vmem:[%s1278_s4 + $0x88] sm:$0xff] }
  0x67   : > { %612 = vst [vmem:[%s1293_s17 + $0x60] sm:$0xff] %v484_v39  ;;  %v487_v48 = vadd.f32 %v359_v46, %v231_v45  ;;  %v360_v49 = vld [vmem:[#allocation5 + $0x80] sm:$0xff]  ;;  %v361_v51 = vld [vmem:[#allocation5 + $0x88] sm:$0xff]  ;;  %613 = vst [vmem:[%s1293_s17 + $0x68] sm:$0xff] %v485_v43 }
  0x68   : > { %614 = vst [vmem:[%s1293_s17 + $0x70] sm:$0xff] %v486_v44  ;;  %v488_v52 = vadd.f32 %v360_v49, %v232_v47  ;;  %v489_v53 = vadd.f32 %v361_v51, %v233_v50  ;;  %v234_v54 = vld [vmem:[%s1278_s4 + $0x90] sm:$0xff]  ;;  %v235_v56 = vld [vmem:[%s1278_s4 + $0x98] sm:$0xff]  ;;  %v236_v59 = vld [vmem:[%s1278_s4 + $0xa0] sm:$0xff] }
  0x69   : > { %v362_v55 = vld [vmem:[#allocation5 + $0x90] sm:$0xff]  ;;  %615 = vst [vmem:[%s1293_s17 + $0x78] sm:$0xff] %v487_v48  ;;  %v363_v58 = vld [vmem:[#allocation5 + $0x98] sm:$0xff]  ;;  %v364_v60 = vld [vmem:[#allocation5 + $0xa0] sm:$0xff] }
  0x6a   : > { %v490_v57 = vadd.f32 %v362_v55, %v234_v54  ;;  %616 = vst [vmem:[%s1293_s17 + $0x80] sm:$0xff] %v488_v52  ;;  %617 = vst [vmem:[%s1293_s17 + $0x88] sm:$0xff] %v489_v53  ;;  %v491_v61 = vadd.f32 %v363_v58, %v235_v56  ;;  %v492_v62 = vadd.f32 %v364_v60, %v236_v59  ;;  %v237_v63 = vld [vmem:[%s1278_s4 + $0xa8] sm:$0xff]  ;;  %v238_v1 = vld [vmem:[%s1278_s4 + $0xb0] sm:$0xff] }
  0x6b   : > { %v365_v0 = vld [vmem:[#allocation5 + $0xa8] sm:$0xff]  ;;  %v366_v3 = vld [vmem:[#allocation5 + $0xb0] sm:$0xff]  ;;  %v239_v4 = vld [vmem:[%s1278_s4 + $0xb8] sm:$0xff] }
  0x6c   : > { %618 = vst [vmem:[%s1293_s17 + $0x90] sm:$0xff] %v490_v57  ;;  %v493_v2 = vadd.f32 %v365_v0, %v237_v63  ;;  %v367_v5 = vld [vmem:[#allocation5 + $0xb8] sm:$0xff]  ;;  %619 = vst [vmem:[%s1293_s17 + $0x98] sm:$0xff] %v491_v61  ;;  %v494_v6 = vadd.f32 %v366_v3, %v238_v1  ;;  %v240_v8 = vld [vmem:[%s1278_s4 + $0xc0] sm:$0xff] }
  0x6d   : > { %620 = vst [vmem:[%s1293_s17 + $0xa0] sm:$0xff] %v492_v62  ;;  %v495_v7 = vadd.f32 %v367_v5, %v239_v4  ;;  %v368_v9 = vld [vmem:[#allocation5 + $0xc0] sm:$0xff]  ;;  %v241_v10 = vld [vmem:[%s1278_s4 + $0xc8] sm:$0xff]  ;;  %v242_v13 = vld [vmem:[%s1278_s4 + $0xd0] sm:$0xff] }
  0x6e   : > { %621 = vst [vmem:[%s1293_s17 + $0xa8] sm:$0xff] %v493_v2  ;;  %v496_v11 = vadd.f32 %v368_v9, %v240_v8  ;;  %v369_v12 = vld [vmem:[#allocation5 + $0xc8] sm:$0xff]  ;;  %v370_v14 = vld [vmem:[#allocation5 + $0xd0] sm:$0xff]  ;;  %622 = vst [vmem:[%s1293_s17 + $0xb0] sm:$0xff] %v494_v6 }
  0x6f   : > { %623 = vst [vmem:[%s1293_s17 + $0xb8] sm:$0xff] %v495_v7  ;;  %v497_v15 = vadd.f32 %v369_v12, %v241_v10  ;;  %v498_v16 = vadd.f32 %v370_v14, %v242_v13  ;;  %v243_v17 = vld [vmem:[%s1278_s4 + $0xd8] sm:$0xff]  ;;  %v244_v19 = vld [vmem:[%s1278_s4 + $0xe0] sm:$0xff]  ;;  %v245_v22 = vld [vmem:[%s1278_s4 + $0xe8] sm:$0xff] }
  0x70   : > { %v371_v18 = vld [vmem:[#allocation5 + $0xd8] sm:$0xff]  ;;  %624 = vst [vmem:[%s1293_s17 + $0xc0] sm:$0xff] %v496_v11  ;;  %v372_v21 = vld [vmem:[#allocation5 + $0xe0] sm:$0xff]  ;;  %v373_v23 = vld [vmem:[#allocation5 + $0xe8] sm:$0xff] }
  0x71   : > { %v499_v20 = vadd.f32 %v371_v18, %v243_v17  ;;  %625 = vst [vmem:[%s1293_s17 + $0xc8] sm:$0xff] %v497_v15  ;;  %626 = vst [vmem:[%s1293_s17 + $0xd0] sm:$0xff] %v498_v16  ;;  %v500_v24 = vadd.f32 %v372_v21, %v244_v19  ;;  %v501_v25 = vadd.f32 %v373_v23, %v245_v22  ;;  %v246_v26 = vld [vmem:[%s1278_s4 + $0xf0] sm:$0xff]  ;;  %v247_v28 = vld [vmem:[%s1278_s4 + $0xf8] sm:$0xff] }
  0x72   : > { %v374_v27 = vld [vmem:[#allocation5 + $0xf0] sm:$0xff]  ;;  %v375_v30 = vld [vmem:[#allocation5 + $0xf8] sm:$0xff]  ;;  %v248_v31 = vld [vmem:[%s1278_s4 + $0x100] sm:$0xff] }
  0x73   : > { %627 = vst [vmem:[%s1293_s17 + $0xd8] sm:$0xff] %v499_v20  ;;  %v502_v29 = vadd.f32 %v374_v27, %v246_v26  ;;  %v376_v32 = vld [vmem:[#allocation5 + $0x100] sm:$0xff]  ;;  %628 = vst [vmem:[%s1293_s17 + $0xe0] sm:$0xff] %v500_v24  ;;  %v503_v33 = vadd.f32 %v375_v30, %v247_v28  ;;  %v249_v35 = vld [vmem:[%s1278_s4 + $0x108] sm:$0xff] }
  0x74   : > { %629 = vst [vmem:[%s1293_s17 + $0xe8] sm:$0xff] %v501_v25  ;;  %v504_v34 = vadd.f32 %v376_v32, %v248_v31  ;;  %v377_v36 = vld [vmem:[#allocation5 + $0x108] sm:$0xff]  ;;  %v250_v37 = vld [vmem:[%s1278_s4 + $0x110] sm:$0xff]  ;;  %v251_v40 = vld [vmem:[%s1278_s4 + $0x118] sm:$0xff] }
  0x75   : > { %630 = vst [vmem:[%s1293_s17 + $0xf0] sm:$0xff] %v502_v29  ;;  %v505_v38 = vadd.f32 %v377_v36, %v249_v35  ;;  %v378_v39 = vld [vmem:[#allocation5 + $0x110] sm:$0xff]  ;;  %v379_v41 = vld [vmem:[#allocation5 + $0x118] sm:$0xff]  ;;  %631 = vst [vmem:[%s1293_s17 + $0xf8] sm:$0xff] %v503_v33 }
  0x76   : > { %632 = vst [vmem:[%s1293_s17 + $0x100] sm:$0xff] %v504_v34  ;;  %v506_v42 = vadd.f32 %v378_v39, %v250_v37  ;;  %v507_v43 = vadd.f32 %v379_v41, %v251_v40  ;;  %v252_v44 = vld [vmem:[%s1278_s4 + $0x120] sm:$0xff]  ;;  %v253_v46 = vld [vmem:[%s1278_s4 + $0x128] sm:$0xff]  ;;  %v254_v49 = vld [vmem:[%s1278_s4 + $0x130] sm:$0xff] }
  0x77   : > { %v380_v45 = vld [vmem:[#allocation5 + $0x120] sm:$0xff]  ;;  %633 = vst [vmem:[%s1293_s17 + $0x108] sm:$0xff] %v505_v38  ;;  %v381_v48 = vld [vmem:[#allocation5 + $0x128] sm:$0xff]  ;;  %v382_v50 = vld [vmem:[#allocation5 + $0x130] sm:$0xff] }
  0x78   : > { %v508_v47 = vadd.f32 %v380_v45, %v252_v44  ;;  %634 = vst [vmem:[%s1293_s17 + $0x110] sm:$0xff] %v506_v42  ;;  %635 = vst [vmem:[%s1293_s17 + $0x118] sm:$0xff] %v507_v43  ;;  %v509_v51 = vadd.f32 %v381_v48, %v253_v46  ;;  %v510_v52 = vadd.f32 %v382_v50, %v254_v49  ;;  %v255_v53 = vld [vmem:[%s1278_s4 + $0x138] sm:$0xff]  ;;  %v256_v55 = vld [vmem:[%s1278_s4 + $0x140] sm:$0xff] }
  0x79   : > { %v383_v54 = vld [vmem:[#allocation5 + $0x138] sm:$0xff]  ;;  %v384_v57 = vld [vmem:[#allocation5 + $0x140] sm:$0xff]  ;;  %v257_v58 = vld [vmem:[%s1278_s4 + $0x148] sm:$0xff] }
  0x7a   : > { %636 = vst [vmem:[%s1293_s17 + $0x120] sm:$0xff] %v508_v47  ;;  %v511_v56 = vadd.f32 %v383_v54, %v255_v53  ;;  %v385_v59 = vld [vmem:[#allocation5 + $0x148] sm:$0xff]  ;;  %637 = vst [vmem:[%s1293_s17 + $0x128] sm:$0xff] %v509_v51  ;;  %v512_v60 = vadd.f32 %v384_v57, %v256_v55  ;;  %v258_v62 = vld [vmem:[%s1278_s4 + $0x150] sm:$0xff] }
  0x7b   : > { %638 = vst [vmem:[%s1293_s17 + $0x130] sm:$0xff] %v510_v52  ;;  %v513_v61 = vadd.f32 %v385_v59, %v257_v58  ;;  %v386_v63 = vld [vmem:[#allocation5 + $0x150] sm:$0xff]  ;;  %v259_v0 = vld [vmem:[%s1278_s4 + $0x158] sm:$0xff]  ;;  %v260_v3 = vld [vmem:[%s1278_s4 + $0x160] sm:$0xff] }
  0x7c   : > { %639 = vst [vmem:[%s1293_s17 + $0x138] sm:$0xff] %v511_v56  ;;  %v514_v1 = vadd.f32 %v386_v63, %v258_v62  ;;  %v387_v2 = vld [vmem:[#allocation5 + $0x158] sm:$0xff]  ;;  %v388_v4 = vld [vmem:[#allocation5 + $0x160] sm:$0xff]  ;;  %640 = vst [vmem:[%s1293_s17 + $0x140] sm:$0xff] %v512_v60 }
  0x7d   : > { %641 = vst [vmem:[%s1293_s17 + $0x148] sm:$0xff] %v513_v61  ;;  %v515_v5 = vadd.f32 %v387_v2, %v259_v0  ;;  %v516_v6 = vadd.f32 %v388_v4, %v260_v3  ;;  %v261_v7 = vld [vmem:[%s1278_s4 + $0x168] sm:$0xff]  ;;  %v262_v9 = vld [vmem:[%s1278_s4 + $0x170] sm:$0xff]  ;;  %v263_v12 = vld [vmem:[%s1278_s4 + $0x178] sm:$0xff] }
  0x7e   : > { %v389_v8 = vld [vmem:[#allocation5 + $0x168] sm:$0xff]  ;;  %642 = vst [vmem:[%s1293_s17 + $0x150] sm:$0xff] %v514_v1  ;;  %v390_v11 = vld [vmem:[#allocation5 + $0x170] sm:$0xff]  ;;  %v391_v13 = vld [vmem:[#allocation5 + $0x178] sm:$0xff] }
  0x7f   : > { %v517_v10 = vadd.f32 %v389_v8, %v261_v7  ;;  %643 = vst [vmem:[%s1293_s17 + $0x158] sm:$0xff] %v515_v5  ;;  %644 = vst [vmem:[%s1293_s17 + $0x160] sm:$0xff] %v516_v6  ;;  %v518_v14 = vadd.f32 %v390_v11, %v262_v9  ;;  %v519_v15 = vadd.f32 %v391_v13, %v263_v12  ;;  %v264_v16 = vld [vmem:[%s1278_s4 + $0x180] sm:$0xff]  ;;  %v265_v18 = vld [vmem:[%s1278_s4 + $0x188] sm:$0xff] }
  0x80   : > { %v392_v17 = vld [vmem:[#allocation5 + $0x180] sm:$0xff]  ;;  %v393_v20 = vld [vmem:[#allocation5 + $0x188] sm:$0xff]  ;;  %v266_v21 = vld [vmem:[%s1278_s4 + $0x190] sm:$0xff] }
  0x81   : > { %645 = vst [vmem:[%s1293_s17 + $0x168] sm:$0xff] %v517_v10  ;;  %v520_v19 = vadd.f32 %v392_v17, %v264_v16  ;;  %v394_v22 = vld [vmem:[#allocation5 + $0x190] sm:$0xff]  ;;  %646 = vst [vmem:[%s1293_s17 + $0x170] sm:$0xff] %v518_v14  ;;  %v521_v23 = vadd.f32 %v393_v20, %v265_v18  ;;  %v267_v25 = vld [vmem:[%s1278_s4 + $0x198] sm:$0xff] }
  0x82   : > { %647 = vst [vmem:[%s1293_s17 + $0x178] sm:$0xff] %v519_v15  ;;  %v522_v24 = vadd.f32 %v394_v22, %v266_v21  ;;  %v395_v26 = vld [vmem:[#allocation5 + $0x198] sm:$0xff]  ;;  %v268_v27 = vld [vmem:[%s1278_s4 + $0x1a0] sm:$0xff]  ;;  %v269_v30 = vld [vmem:[%s1278_s4 + $0x1a8] sm:$0xff] }
  0x83   : > { %648 = vst [vmem:[%s1293_s17 + $0x180] sm:$0xff] %v520_v19  ;;  %v523_v28 = vadd.f32 %v395_v26, %v267_v25  ;;  %v396_v29 = vld [vmem:[#allocation5 + $0x1a0] sm:$0xff]  ;;  %v397_v31 = vld [vmem:[#allocation5 + $0x1a8] sm:$0xff]  ;;  %649 = vst [vmem:[%s1293_s17 + $0x188] sm:$0xff] %v521_v23 }
  0x84   : > { %650 = vst [vmem:[%s1293_s17 + $0x190] sm:$0xff] %v522_v24  ;;  %v524_v32 = vadd.f32 %v396_v29, %v268_v27  ;;  %v525_v33 = vadd.f32 %v397_v31, %v269_v30  ;;  %v270_v34 = vld [vmem:[%s1278_s4 + $0x1b0] sm:$0xff]  ;;  %v271_v36 = vld [vmem:[%s1278_s4 + $0x1b8] sm:$0xff]  ;;  %v272_v39 = vld [vmem:[%s1278_s4 + $0x1c0] sm:$0xff] }
  0x85   : > { %v398_v35 = vld [vmem:[#allocation5 + $0x1b0] sm:$0xff]  ;;  %651 = vst [vmem:[%s1293_s17 + $0x198] sm:$0xff] %v523_v28  ;;  %v399_v38 = vld [vmem:[#allocation5 + $0x1b8] sm:$0xff]  ;;  %v400_v40 = vld [vmem:[#allocation5 + $0x1c0] sm:$0xff] }
  0x86   : > { %v526_v37 = vadd.f32 %v398_v35, %v270_v34  ;;  %652 = vst [vmem:[%s1293_s17 + $0x1a0] sm:$0xff] %v524_v32  ;;  %653 = vst [vmem:[%s1293_s17 + $0x1a8] sm:$0xff] %v525_v33  ;;  %v527_v41 = vadd.f32 %v399_v38, %v271_v36  ;;  %v528_v42 = vadd.f32 %v400_v40, %v272_v39  ;;  %v273_v43 = vld [vmem:[%s1278_s4 + $0x1c8] sm:$0xff]  ;;  %v274_v45 = vld [vmem:[%s1278_s4 + $0x1d0] sm:$0xff] }
  0x87   : > { %v401_v44 = vld [vmem:[#allocation5 + $0x1c8] sm:$0xff]  ;;  %v402_v47 = vld [vmem:[#allocation5 + $0x1d0] sm:$0xff]  ;;  %v275_v48 = vld [vmem:[%s1278_s4 + $0x1d8] sm:$0xff] }
  0x88   : > { %654 = vst [vmem:[%s1293_s17 + $0x1b0] sm:$0xff] %v526_v37  ;;  %v529_v46 = vadd.f32 %v401_v44, %v273_v43  ;;  %v403_v49 = vld [vmem:[#allocation5 + $0x1d8] sm:$0xff]  ;;  %655 = vst [vmem:[%s1293_s17 + $0x1b8] sm:$0xff] %v527_v41  ;;  %v530_v50 = vadd.f32 %v402_v47, %v274_v45  ;;  %v276_v52 = vld [vmem:[%s1278_s4 + $0x1e0] sm:$0xff] }
  0x89   : > { %656 = vst [vmem:[%s1293_s17 + $0x1c0] sm:$0xff] %v528_v42  ;;  %v531_v51 = vadd.f32 %v403_v49, %v275_v48  ;;  %v404_v53 = vld [vmem:[#allocation5 + $0x1e0] sm:$0xff]  ;;  %v277_v54 = vld [vmem:[%s1278_s4 + $0x1e8] sm:$0xff]  ;;  %v278_v57 = vld [vmem:[%s1278_s4 + $0x1f0] sm:$0xff] }
  0x8a   : > { %657 = vst [vmem:[%s1293_s17 + $0x1c8] sm:$0xff] %v529_v46  ;;  %v532_v55 = vadd.f32 %v404_v53, %v276_v52  ;;  %v405_v56 = vld [vmem:[#allocation5 + $0x1e8] sm:$0xff]  ;;  %v406_v58 = vld [vmem:[#allocation5 + $0x1f0] sm:$0xff]  ;;  %658 = vst [vmem:[%s1293_s17 + $0x1d0] sm:$0xff] %v530_v50 }
  0x8b   : > { %659 = vst [vmem:[%s1293_s17 + $0x1d8] sm:$0xff] %v531_v51  ;;  %v533_v59 = vadd.f32 %v405_v56, %v277_v54  ;;  %v534_v60 = vadd.f32 %v406_v58, %v278_v57  ;;  %v279_v61 = vld [vmem:[%s1278_s4 + $0x1f8] sm:$0xff]  ;;  %v280_v63 = vld [vmem:[%s1278_s4 + $0x200] sm:$0xff]  ;;  %v281_v2 = vld [vmem:[%s1278_s4 + $0x208] sm:$0xff] }
  0x8c   : > { %v407_v62 = vld [vmem:[#allocation5 + $0x1f8] sm:$0xff]  ;;  %660 = vst [vmem:[%s1293_s17 + $0x1e0] sm:$0xff] %v532_v55  ;;  %v408_v1 = vld [vmem:[#allocation5 + $0x200] sm:$0xff]  ;;  %v409_v3 = vld [vmem:[#allocation5 + $0x208] sm:$0xff] }
  0x8d   : > { %v535_v0 = vadd.f32 %v407_v62, %v279_v61  ;;  %661 = vst [vmem:[%s1293_s17 + $0x1e8] sm:$0xff] %v533_v59  ;;  %662 = vst [vmem:[%s1293_s17 + $0x1f0] sm:$0xff] %v534_v60  ;;  %v536_v4 = vadd.f32 %v408_v1, %v280_v63  ;;  %v537_v5 = vadd.f32 %v409_v3, %v281_v2  ;;  %v282_v6 = vld [vmem:[%s1278_s4 + $0x210] sm:$0xff]  ;;  %v283_v8 = vld [vmem:[%s1278_s4 + $0x218] sm:$0xff] }
  0x8e   : > { %v410_v7 = vld [vmem:[#allocation5 + $0x210] sm:$0xff]  ;;  %v411_v10 = vld [vmem:[#allocation5 + $0x218] sm:$0xff]  ;;  %v284_v11 = vld [vmem:[%s1278_s4 + $0x220] sm:$0xff] }
  0x8f   : > { %663 = vst [vmem:[%s1293_s17 + $0x1f8] sm:$0xff] %v535_v0  ;;  %v538_v9 = vadd.f32 %v410_v7, %v282_v6  ;;  %v412_v12 = vld [vmem:[#allocation5 + $0x220] sm:$0xff]  ;;  %664 = vst [vmem:[%s1293_s17 + $0x200] sm:$0xff] %v536_v4  ;;  %v539_v13 = vadd.f32 %v411_v10, %v283_v8  ;;  %v285_v15 = vld [vmem:[%s1278_s4 + $0x228] sm:$0xff] }
  0x90   : > { %665 = vst [vmem:[%s1293_s17 + $0x208] sm:$0xff] %v537_v5  ;;  %v540_v14 = vadd.f32 %v412_v12, %v284_v11  ;;  %v413_v16 = vld [vmem:[#allocation5 + $0x228] sm:$0xff]  ;;  %v286_v17 = vld [vmem:[%s1278_s4 + $0x230] sm:$0xff]  ;;  %v287_v20 = vld [vmem:[%s1278_s4 + $0x238] sm:$0xff] }
  0x91   : > { %666 = vst [vmem:[%s1293_s17 + $0x210] sm:$0xff] %v538_v9  ;;  %v541_v18 = vadd.f32 %v413_v16, %v285_v15  ;;  %v414_v19 = vld [vmem:[#allocation5 + $0x230] sm:$0xff]  ;;  %v415_v21 = vld [vmem:[#allocation5 + $0x238] sm:$0xff]  ;;  %667 = vst [vmem:[%s1293_s17 + $0x218] sm:$0xff] %v539_v13 }
  0x92   : > { %668 = vst [vmem:[%s1293_s17 + $0x220] sm:$0xff] %v540_v14  ;;  %v542_v22 = vadd.f32 %v414_v19, %v286_v17  ;;  %v543_v23 = vadd.f32 %v415_v21, %v287_v20  ;;  %v288_v24 = vld [vmem:[%s1278_s4 + $0x240] sm:$0xff]  ;;  %v289_v26 = vld [vmem:[%s1278_s4 + $0x248] sm:$0xff]  ;;  %v290_v29 = vld [vmem:[%s1278_s4 + $0x250] sm:$0xff] }
  0x93   : > { %v416_v25 = vld [vmem:[#allocation5 + $0x240] sm:$0xff]  ;;  %669 = vst [vmem:[%s1293_s17 + $0x228] sm:$0xff] %v541_v18  ;;  %v417_v28 = vld [vmem:[#allocation5 + $0x248] sm:$0xff]  ;;  %v418_v30 = vld [vmem:[#allocation5 + $0x250] sm:$0xff] }
  0x94   : > { %v544_v27 = vadd.f32 %v416_v25, %v288_v24  ;;  %670 = vst [vmem:[%s1293_s17 + $0x230] sm:$0xff] %v542_v22  ;;  %671 = vst [vmem:[%s1293_s17 + $0x238] sm:$0xff] %v543_v23  ;;  %v545_v31 = vadd.f32 %v417_v28, %v289_v26  ;;  %v546_v32 = vadd.f32 %v418_v30, %v290_v29  ;;  %v291_v33 = vld [vmem:[%s1278_s4 + $0x258] sm:$0xff]  ;;  %v292_v35 = vld [vmem:[%s1278_s4 + $0x260] sm:$0xff] }
  0x95   : > { %v419_v34 = vld [vmem:[#allocation5 + $0x258] sm:$0xff]  ;;  %v420_v37 = vld [vmem:[#allocation5 + $0x260] sm:$0xff]  ;;  %v293_v38 = vld [vmem:[%s1278_s4 + $0x268] sm:$0xff] }
  0x96   : > { %672 = vst [vmem:[%s1293_s17 + $0x240] sm:$0xff] %v544_v27  ;;  %v547_v36 = vadd.f32 %v419_v34, %v291_v33  ;;  %v421_v39 = vld [vmem:[#allocation5 + $0x268] sm:$0xff]  ;;  %673 = vst [vmem:[%s1293_s17 + $0x248] sm:$0xff] %v545_v31  ;;  %v548_v40 = vadd.f32 %v420_v37, %v292_v35  ;;  %v294_v42 = vld [vmem:[%s1278_s4 + $0x270] sm:$0xff] }
  0x97   : > { %674 = vst [vmem:[%s1293_s17 + $0x250] sm:$0xff] %v546_v32  ;;  %v549_v41 = vadd.f32 %v421_v39, %v293_v38  ;;  %v422_v43 = vld [vmem:[#allocation5 + $0x270] sm:$0xff]  ;;  %v295_v44 = vld [vmem:[%s1278_s4 + $0x278] sm:$0xff]  ;;  %v296_v47 = vld [vmem:[%s1278_s4 + $0x280] sm:$0xff] }
  0x98   : > { %675 = vst [vmem:[%s1293_s17 + $0x258] sm:$0xff] %v547_v36  ;;  %v550_v45 = vadd.f32 %v422_v43, %v294_v42  ;;  %v423_v46 = vld [vmem:[#allocation5 + $0x278] sm:$0xff]  ;;  %v424_v48 = vld [vmem:[#allocation5 + $0x280] sm:$0xff]  ;;  %676 = vst [vmem:[%s1293_s17 + $0x260] sm:$0xff] %v548_v40 }
  0x99   : > { %677 = vst [vmem:[%s1293_s17 + $0x268] sm:$0xff] %v549_v41  ;;  %v551_v49 = vadd.f32 %v423_v46, %v295_v44  ;;  %v552_v50 = vadd.f32 %v424_v48, %v296_v47  ;;  %v297_v51 = vld [vmem:[%s1278_s4 + $0x288] sm:$0xff]  ;;  %v298_v53 = vld [vmem:[%s1278_s4 + $0x290] sm:$0xff]  ;;  %v299_v56 = vld [vmem:[%s1278_s4 + $0x298] sm:$0xff] }
  0x9a   : > { %v425_v52 = vld [vmem:[#allocation5 + $0x288] sm:$0xff]  ;;  %678 = vst [vmem:[%s1293_s17 + $0x270] sm:$0xff] %v550_v45  ;;  %v426_v55 = vld [vmem:[#allocation5 + $0x290] sm:$0xff]  ;;  %v427_v57 = vld [vmem:[#allocation5 + $0x298] sm:$0xff] }
  0x9b   : > { %v553_v54 = vadd.f32 %v425_v52, %v297_v51  ;;  %679 = vst [vmem:[%s1293_s17 + $0x278] sm:$0xff] %v551_v49  ;;  %680 = vst [vmem:[%s1293_s17 + $0x280] sm:$0xff] %v552_v50  ;;  %v554_v58 = vadd.f32 %v426_v55, %v298_v53  ;;  %v555_v59 = vadd.f32 %v427_v57, %v299_v56  ;;  %v300_v60 = vld [vmem:[%s1278_s4 + $0x2a0] sm:$0xff]  ;;  %v301_v62 = vld [vmem:[%s1278_s4 + $0x2a8] sm:$0xff] }
  0x9c   : > { %v428_v61 = vld [vmem:[#allocation5 + $0x2a0] sm:$0xff]  ;;  %v429_v0 = vld [vmem:[#allocation5 + $0x2a8] sm:$0xff]  ;;  %v302_v1 = vld [vmem:[%s1278_s4 + $0x2b0] sm:$0xff] }
  0x9d   : > { %681 = vst [vmem:[%s1293_s17 + $0x288] sm:$0xff] %v553_v54  ;;  %v556_v63 = vadd.f32 %v428_v61, %v300_v60  ;;  %v430_v2 = vld [vmem:[#allocation5 + $0x2b0] sm:$0xff]  ;;  %682 = vst [vmem:[%s1293_s17 + $0x290] sm:$0xff] %v554_v58  ;;  %v557_v3 = vadd.f32 %v429_v0, %v301_v62  ;;  %v303_v5 = vld [vmem:[%s1278_s4 + $0x2b8] sm:$0xff] }
  0x9e   : > { %683 = vst [vmem:[%s1293_s17 + $0x298] sm:$0xff] %v555_v59  ;;  %v558_v4 = vadd.f32 %v430_v2, %v302_v1  ;;  %v431_v6 = vld [vmem:[#allocation5 + $0x2b8] sm:$0xff]  ;;  %v304_v7 = vld [vmem:[%s1278_s4 + $0x2c0] sm:$0xff]  ;;  %v305_v10 = vld [vmem:[%s1278_s4 + $0x2c8] sm:$0xff] }
  0x9f   : > { %684 = vst [vmem:[%s1293_s17 + $0x2a0] sm:$0xff] %v556_v63  ;;  %v559_v8 = vadd.f32 %v431_v6, %v303_v5  ;;  %v432_v9 = vld [vmem:[#allocation5 + $0x2c0] sm:$0xff]  ;;  %v433_v11 = vld [vmem:[#allocation5 + $0x2c8] sm:$0xff]  ;;  %685 = vst [vmem:[%s1293_s17 + $0x2a8] sm:$0xff] %v557_v3 }
  0xa0   : > { %686 = vst [vmem:[%s1293_s17 + $0x2b0] sm:$0xff] %v558_v4  ;;  %v560_v12 = vadd.f32 %v432_v9, %v304_v7  ;;  %v561_v13 = vadd.f32 %v433_v11, %v305_v10  ;;  %v306_v14 = vld [vmem:[%s1278_s4 + $0x2d0] sm:$0xff]  ;;  %v307_v16 = vld [vmem:[%s1278_s4 + $0x2d8] sm:$0xff]  ;;  %v308_v19 = vld [vmem:[%s1278_s4 + $0x2e0] sm:$0xff] }
  0xa1   : > { %v434_v15 = vld [vmem:[#allocation5 + $0x2d0] sm:$0xff]  ;;  %687 = vst [vmem:[%s1293_s17 + $0x2b8] sm:$0xff] %v559_v8  ;;  %v435_v18 = vld [vmem:[#allocation5 + $0x2d8] sm:$0xff]  ;;  %v436_v20 = vld [vmem:[#allocation5 + $0x2e0] sm:$0xff] }
  0xa2   : > { %v562_v17 = vadd.f32 %v434_v15, %v306_v14  ;;  %688 = vst [vmem:[%s1293_s17 + $0x2c0] sm:$0xff] %v560_v12  ;;  %689 = vst [vmem:[%s1293_s17 + $0x2c8] sm:$0xff] %v561_v13  ;;  %v563_v21 = vadd.f32 %v435_v18, %v307_v16  ;;  %v564_v22 = vadd.f32 %v436_v20, %v308_v19  ;;  %v309_v23 = vld [vmem:[%s1278_s4 + $0x2e8] sm:$0xff]  ;;  %v310_v25 = vld [vmem:[%s1278_s4 + $0x2f0] sm:$0xff] }
  0xa3   : > { %v437_v24 = vld [vmem:[#allocation5 + $0x2e8] sm:$0xff]  ;;  %v438_v27 = vld [vmem:[#allocation5 + $0x2f0] sm:$0xff]  ;;  %v311_v28 = vld [vmem:[%s1278_s4 + $0x2f8] sm:$0xff] }
  0xa4   : > { %690 = vst [vmem:[%s1293_s17 + $0x2d0] sm:$0xff] %v562_v17  ;;  %v565_v26 = vadd.f32 %v437_v24, %v309_v23  ;;  %v439_v29 = vld [vmem:[#allocation5 + $0x2f8] sm:$0xff]  ;;  %691 = vst [vmem:[%s1293_s17 + $0x2d8] sm:$0xff] %v563_v21  ;;  %v566_v30 = vadd.f32 %v438_v27, %v310_v25  ;;  %v312_v32 = vld [vmem:[%s1278_s4 + $0x300] sm:$0xff] }
  0xa5   : > { %692 = vst [vmem:[%s1293_s17 + $0x2e0] sm:$0xff] %v564_v22  ;;  %v567_v31 = vadd.f32 %v439_v29, %v311_v28  ;;  %v440_v33 = vld [vmem:[#allocation5 + $0x300] sm:$0xff]  ;;  %v313_v34 = vld [vmem:[%s1278_s4 + $0x308] sm:$0xff]  ;;  %v314_v37 = vld [vmem:[%s1278_s4 + $0x310] sm:$0xff] }
  0xa6   : > { %693 = vst [vmem:[%s1293_s17 + $0x2e8] sm:$0xff] %v565_v26  ;;  %v568_v35 = vadd.f32 %v440_v33, %v312_v32  ;;  %v441_v36 = vld [vmem:[#allocation5 + $0x308] sm:$0xff]  ;;  %v442_v38 = vld [vmem:[#allocation5 + $0x310] sm:$0xff]  ;;  %694 = vst [vmem:[%s1293_s17 + $0x2f0] sm:$0xff] %v566_v30 }
  0xa7   : > { %695 = vst [vmem:[%s1293_s17 + $0x2f8] sm:$0xff] %v567_v31  ;;  %v569_v39 = vadd.f32 %v441_v36, %v313_v34  ;;  %v570_v40 = vadd.f32 %v442_v38, %v314_v37  ;;  %v315_v41 = vld [vmem:[%s1278_s4 + $0x318] sm:$0xff]  ;;  %v316_v43 = vld [vmem:[%s1278_s4 + $0x320] sm:$0xff]  ;;  %v317_v46 = vld [vmem:[%s1278_s4 + $0x328] sm:$0xff] }
  0xa8   : > { %v443_v42 = vld [vmem:[#allocation5 + $0x318] sm:$0xff]  ;;  %696 = vst [vmem:[%s1293_s17 + $0x300] sm:$0xff] %v568_v35  ;;  %v444_v45 = vld [vmem:[#allocation5 + $0x320] sm:$0xff]  ;;  %v445_v47 = vld [vmem:[#allocation5 + $0x328] sm:$0xff] }
  0xa9   : > { %v571_v44 = vadd.f32 %v443_v42, %v315_v41  ;;  %697 = vst [vmem:[%s1293_s17 + $0x308] sm:$0xff] %v569_v39  ;;  %698 = vst [vmem:[%s1293_s17 + $0x310] sm:$0xff] %v570_v40  ;;  %v572_v48 = vadd.f32 %v444_v45, %v316_v43  ;;  %v573_v49 = vadd.f32 %v445_v47, %v317_v46  ;;  %v318_v50 = vld [vmem:[%s1278_s4 + $0x330] sm:$0xff]  ;;  %v319_v52 = vld [vmem:[%s1278_s4 + $0x338] sm:$0xff] }
  0xaa   : > { %v446_v51 = vld [vmem:[#allocation5 + $0x330] sm:$0xff]  ;;  %v447_v54 = vld [vmem:[#allocation5 + $0x338] sm:$0xff]  ;;  %v320_v55 = vld [vmem:[%s1278_s4 + $0x340] sm:$0xff] }
  0xab   : > { %699 = vst [vmem:[%s1293_s17 + $0x318] sm:$0xff] %v571_v44  ;;  %v574_v53 = vadd.f32 %v446_v51, %v318_v50  ;;  %v448_v56 = vld [vmem:[#allocation5 + $0x340] sm:$0xff]  ;;  %700 = vst [vmem:[%s1293_s17 + $0x320] sm:$0xff] %v572_v48  ;;  %v575_v57 = vadd.f32 %v447_v54, %v319_v52  ;;  %v321_v59 = vld [vmem:[%s1278_s4 + $0x348] sm:$0xff] }
  0xac   : > { %701 = vst [vmem:[%s1293_s17 + $0x328] sm:$0xff] %v573_v49  ;;  %v576_v58 = vadd.f32 %v448_v56, %v320_v55  ;;  %v449_v60 = vld [vmem:[#allocation5 + $0x348] sm:$0xff]  ;;  %v322_v61 = vld [vmem:[%s1278_s4 + $0x350] sm:$0xff]  ;;  %v323_v0 = vld [vmem:[%s1278_s4 + $0x358] sm:$0xff] }
  0xad   : > { %702 = vst [vmem:[%s1293_s17 + $0x330] sm:$0xff] %v574_v53  ;;  %v577_v62 = vadd.f32 %v449_v60, %v321_v59  ;;  %v450_v63 = vld [vmem:[#allocation5 + $0x350] sm:$0xff]  ;;  %v451_v1 = vld [vmem:[#allocation5 + $0x358] sm:$0xff]  ;;  %703 = vst [vmem:[%s1293_s17 + $0x338] sm:$0xff] %v575_v57 }
  0xae   : > { %704 = vst [vmem:[%s1293_s17 + $0x340] sm:$0xff] %v576_v58  ;;  %v578_v2 = vadd.f32 %v450_v63, %v322_v61  ;;  %v579_v3 = vadd.f32 %v451_v1, %v323_v0  ;;  %v324_v4 = vld [vmem:[%s1278_s4 + $0x360] sm:$0xff]  ;;  %v325_v6 = vld [vmem:[%s1278_s4 + $0x368] sm:$0xff]  ;;  %v326_v9 = vld [vmem:[%s1278_s4 + $0x370] sm:$0xff] }
  0xaf   : > { %v452_v5 = vld [vmem:[#allocation5 + $0x360] sm:$0xff]  ;;  %705 = vst [vmem:[%s1293_s17 + $0x348] sm:$0xff] %v577_v62  ;;  %v453_v8 = vld [vmem:[#allocation5 + $0x368] sm:$0xff]  ;;  %v454_v10 = vld [vmem:[#allocation5 + $0x370] sm:$0xff] }
  0xb0   : > { %v580_v7 = vadd.f32 %v452_v5, %v324_v4  ;;  %706 = vst [vmem:[%s1293_s17 + $0x350] sm:$0xff] %v578_v2  ;;  %707 = vst [vmem:[%s1293_s17 + $0x358] sm:$0xff] %v579_v3  ;;  %v581_v11 = vadd.f32 %v453_v8, %v325_v6  ;;  %v582_v12 = vadd.f32 %v454_v10, %v326_v9  ;;  %v327_v13 = vld [vmem:[%s1278_s4 + $0x378] sm:$0xff]  ;;  %v328_v15 = vld [vmem:[%s1278_s4 + $0x380] sm:$0xff] }
  0xb1   : > { %v455_v14 = vld [vmem:[#allocation5 + $0x378] sm:$0xff]  ;;  %v456_v17 = vld [vmem:[#allocation5 + $0x380] sm:$0xff]  ;;  %v329_v18 = vld [vmem:[%s1278_s4 + $0x388] sm:$0xff] }
  0xb2   : > { %708 = vst [vmem:[%s1293_s17 + $0x360] sm:$0xff] %v580_v7  ;;  %v583_v16 = vadd.f32 %v455_v14, %v327_v13  ;;  %v457_v19 = vld [vmem:[#allocation5 + $0x388] sm:$0xff]  ;;  %709 = vst [vmem:[%s1293_s17 + $0x368] sm:$0xff] %v581_v11  ;;  %v584_v20 = vadd.f32 %v456_v17, %v328_v15  ;;  %v330_v22 = vld [vmem:[%s1278_s4 + $0x390] sm:$0xff] }
  0xb3   : > { %710 = vst [vmem:[%s1293_s17 + $0x370] sm:$0xff] %v582_v12  ;;  %v585_v21 = vadd.f32 %v457_v19, %v329_v18  ;;  %v458_v23 = vld [vmem:[#allocation5 + $0x390] sm:$0xff]  ;;  %v331_v24 = vld [vmem:[%s1278_s4 + $0x398] sm:$0xff]  ;;  %v332_v27 = vld [vmem:[%s1278_s4 + $0x3a0] sm:$0xff] }
  0xb4   : > { %711 = vst [vmem:[%s1293_s17 + $0x378] sm:$0xff] %v583_v16  ;;  %v586_v25 = vadd.f32 %v458_v23, %v330_v22  ;;  %v459_v26 = vld [vmem:[#allocation5 + $0x398] sm:$0xff]  ;;  %v460_v28 = vld [vmem:[#allocation5 + $0x3a0] sm:$0xff]  ;;  %712 = vst [vmem:[%s1293_s17 + $0x380] sm:$0xff] %v584_v20 }
  0xb5   : > { %713 = vst [vmem:[%s1293_s17 + $0x388] sm:$0xff] %v585_v21  ;;  %v587_v29 = vadd.f32 %v459_v26, %v331_v24  ;;  %v588_v30 = vadd.f32 %v460_v28, %v332_v27  ;;  %v333_v31 = vld [vmem:[%s1278_s4 + $0x3a8] sm:$0xff]  ;;  %v334_v33 = vld [vmem:[%s1278_s4 + $0x3b0] sm:$0xff]  ;;  %v335_v36 = vld [vmem:[%s1278_s4 + $0x3b8] sm:$0xff] }
  0xb6   : > { %v461_v32 = vld [vmem:[#allocation5 + $0x3a8] sm:$0xff]  ;;  %714 = vst [vmem:[%s1293_s17 + $0x390] sm:$0xff] %v586_v25  ;;  %v462_v35 = vld [vmem:[#allocation5 + $0x3b0] sm:$0xff]  ;;  %v463_v37 = vld [vmem:[#allocation5 + $0x3b8] sm:$0xff] }
  0xb7   : > { %v589_v34 = vadd.f32 %v461_v32, %v333_v31  ;;  %715 = vst [vmem:[%s1293_s17 + $0x398] sm:$0xff] %v587_v29  ;;  %716 = vst [vmem:[%s1293_s17 + $0x3a0] sm:$0xff] %v588_v30  ;;  %v590_v38 = vadd.f32 %v462_v35, %v334_v33  ;;  %v591_v39 = vadd.f32 %v463_v37, %v335_v36  ;;  %v336_v40 = vld [vmem:[%s1278_s4 + $0x3c0] sm:$0xff]  ;;  %v337_v42 = vld [vmem:[%s1278_s4 + $0x3c8] sm:$0xff] }
  0xb8   : > { %v464_v41 = vld [vmem:[#allocation5 + $0x3c0] sm:$0xff]  ;;  %v465_v44 = vld [vmem:[#allocation5 + $0x3c8] sm:$0xff]  ;;  %v338_v45 = vld [vmem:[%s1278_s4 + $0x3d0] sm:$0xff] }
  0xb9   : > { %717 = vst [vmem:[%s1293_s17 + $0x3a8] sm:$0xff] %v589_v34  ;;  %v592_v43 = vadd.f32 %v464_v41, %v336_v40  ;;  %v466_v46 = vld [vmem:[#allocation5 + $0x3d0] sm:$0xff]  ;;  %718 = vst [vmem:[%s1293_s17 + $0x3b0] sm:$0xff] %v590_v38  ;;  %v593_v47 = vadd.f32 %v465_v44, %v337_v42  ;;  %v339_v49 = vld [vmem:[%s1278_s4 + $0x3d8] sm:$0xff] }
  0xba   : > { %719 = vst [vmem:[%s1293_s17 + $0x3b8] sm:$0xff] %v591_v39  ;;  %v594_v48 = vadd.f32 %v466_v46, %v338_v45  ;;  %v467_v50 = vld [vmem:[#allocation5 + $0x3d8] sm:$0xff]  ;;  %v340_v51 = vld [vmem:[%s1278_s4 + $0x3e0] sm:$0xff]  ;;  %v341_v54 = vld [vmem:[%s1278_s4 + $0x3e8] sm:$0xff] }
  0xbb   : > { %720 = vst [vmem:[%s1293_s17 + $0x3c0] sm:$0xff] %v592_v43  ;;  %v595_v52 = vadd.f32 %v467_v50, %v339_v49  ;;  %v468_v53 = vld [vmem:[#allocation5 + $0x3e0] sm:$0xff]  ;;  %v469_v55 = vld [vmem:[#allocation5 + $0x3e8] sm:$0xff]  ;;  %721 = vst [vmem:[%s1293_s17 + $0x3c8] sm:$0xff] %v593_v47 }
  0xbc   : > { %722 = vst [vmem:[%s1293_s17 + $0x3d0] sm:$0xff] %v594_v48  ;;  %v596_v56 = vadd.f32 %v468_v53, %v340_v51  ;;  %v597_v57 = vadd.f32 %v469_v55, %v341_v54  ;;  %v342_v58 = vld [vmem:[%s1278_s4 + $0x3f0] sm:$0xff]  ;;  %v343_v60 = vld [vmem:[%s1278_s4 + $0x3f8] sm:$0xff] }
  0xbd   : > { %v470_v59 = vld [vmem:[#allocation5 + $0x3f0] sm:$0xff]  ;;  %723 = vst [vmem:[%s1293_s17 + $0x3d8] sm:$0xff] %v595_v52  ;;  %v471_v62 = vld [vmem:[#allocation5 + $0x3f8] sm:$0xff] }
  0xbe   : > { %v598_v61 = vadd.f32 %v470_v59, %v342_v58  ;;  %724 = vst [vmem:[%s1293_s17 + $0x3e0] sm:$0xff] %v596_v56  ;;  %725 = vst [vmem:[%s1293_s17 + $0x3e8] sm:$0xff] %v597_v57  ;;  %v599_v63 = vadd.f32 %v471_v62, %v343_v60 }
  0xc0   : > { %726 = vst [vmem:[%s1293_s17 + $0x3f0] sm:$0xff] %v598_v61  ;;  %727 = vst [vmem:[%s1293_s17 + $0x3f8] sm:$0xff] %v599_v63 }
  0xc1   : > { %1010 = shalt.err (!%p1007_p9)
}
  0xc2   : > { %s1011_s23 = scalar_lea.hbm %s1547_s16, 16384  ;;  %s1015_s29 = scalar_lea.hbm %s1603_s2, 65536 }
  0xc3   : > { %p1012_p13 = scmp.ne.s32.totalorder %s1547_s16, %s1011_s23  ;;  %p1016_p7 = scmp.lt.u32.totalorder %s1547_s16, %s1603_s2 }
  0xc4   : > { %p1017_p11 = scmp.lt.u32.totalorder %s1015_s29, %s1011_s23  ;;  %p1019_p4 = scmp.lt.u32.totalorder %s1011_s23, %s1547_s16 }
  0xc5   : > { %p1013_p1 = pnand %p1012_p13, %p1215_p12 }
  0xc6   : > { %p1018_p3 = por %p1017_p11, %p1016_p7 }
  0xc7   : > { %p1014_p2 = pneg %p1013_p1 }
  0xc8   : > { %p1020_p6 = por %p1019_p4, %p1018_p3 }
  0xca   : > { %p1021_p8 = pnand %p1020_p6, %p1014_p2 }
  0xcc   : > { %1024 = shalt.err (!%p1021_p8)
}
  0xcd   : > { %s1090_s4 = smov 128   ;;  %s1091_s17 = smov 8  }
  0xce   : > { %868 = dma.vmem_to_hbm [thread:$0]  (%p1215_p12), %s1549_s21, 16384, %s1547_s16, %s729_s7, %s1090_s4, %s1090_s4, %s1091_s17  }
  0xcf PF: > { %p885_p0 = scmp.ge.s32.totalorder %s1083_s14, 2  ;;  %s759_s19 = sand.u32 1, %s1063_s9  }
  0xd0   : > { %p1621_p10 = scmp.ne.s32.totalorder %s1611_s20, 0  ;;  %s760_s12 = scalar_lea.sflag [#allocation4], %s759_s19 }
  0xd2   : > { %p879_p5 = pnand %p885_p0, %p1621_p10 }
  0xd4   : > { %1058 = dma.done.wait (!%p879_p5), %s760_s12, 16384  }
  0xd5   : > { %1060 = vsyncadd (!%p879_p5), %s760_s12, 4294950912  ;;  %s19_s14 = sadd.s32 1, %s1083_s14   ;;  %s1622_s9 = smov %s1067_s10 }
  0xd6   : > { %p16_p9 = scmp.ge.s32.totalorder %s19_s14, 6   ;;  %s1623_s10 = smov %s1071_s11 }
  0xd7   : > { %s1624_s11 = smov %s1224_s3  ;;  %s1625_s12 = smov %s1079_s13 }
  0xd8   : > { %s1626_s13 = smov %s1628_s25  ;;  %18 = sbr.rel (!%p16_p9) target bundleno = 7 (0x7), region = 78 }
  0xdf   :  { %765 = vsyncpa [#allocation3], 1 }
  0xe0   :  { %767 = vsyncpa [#allocation3 + $0x1], 1 }
  0xe1   :  { %768 = vsyncpa [#allocation6], 1 }
  0xe2   :  { %769 = vsyncpa [#allocation4], 1 }
  0xe3   :  { %771 = vsyncpa [#allocation4 + $0x1], 1 }

</bundles_post_ra>
